<compile_context>
chip_gen: v6e
topology: v6e:2x2x1
jax: 0.10.0
libtpu: 0.0.40
codegen_flags: <defaults>
</compile_context>

<pallas_src>
import functools

import jax
import jax.numpy as jnp
from jax.experimental import pallas as pl
from jax.experimental.pallas import tpu as pltpu


def _layernorm_kernel(eps, x_ref, w_ref, b_ref, o_ref):
    x = x_ref[...]                                     # (B, F) whole batch slab
    mean = jnp.mean(x, axis=-1, keepdims=True)         # (B, 1)
    xc = x - mean
    var = jnp.mean(xc * xc, axis=-1, keepdims=True)    # biased var, like F.layer_norm
    inv = jax.lax.rsqrt(var + eps)                     # EUP slot
    o_ref[...] = (xc * inv) * w_ref[...] + b_ref[...]  # w/b broadcast over rows


def layer_norm_forward(x, weight, bias, idx, *, eps=1e-5, elementwise_affine=True):
    """x: (B, C, N, T); weight/bias: (C, N_all, T); idx: (N,) node indices."""
    B, C, N, T = x.shape
    feat = C * N * T

    x2 = x.reshape(B, feat)                            # lane-dense slab, last dim = feat
    if elementwise_affine:
        w2 = weight[:, idx, :].reshape(1, feat)        # PyTorch: self.weight[:, idx, :]
        b2 = bias[:, idx, :].reshape(1, feat)
    else:
        w2 = jnp.ones((1, feat), x.dtype)
        b2 = jnp.zeros((1, feat), x.dtype)

    kernel = functools.partial(_layernorm_kernel, float(eps))

    out = pl.pallas_call(
        kernel,
        out_shape=jax.ShapeDtypeStruct((B, feat), x.dtype),
        grid=(1,),                                     # single step: overhead-bound regime
        in_specs=[
            pl.BlockSpec((B, feat), lambda i: (0, 0)),   # x
            pl.BlockSpec((1, feat), lambda i: (0, 0)),   # gathered weight
            pl.BlockSpec((1, feat), lambda i: (0, 0)),   # gathered bias
        ],
        out_specs=pl.BlockSpec((B, feat), lambda i: (0, 0)),
        compiler_params=pltpu.CompilerParams(dimension_semantics=("arbitrary",)),
    )(x2, w2, b2)

    return out.reshape(B, C, N, T)


def _reference(x, weight, bias, idx, eps, elementwise_affine=True):
    """Pure-JAX mirror of the PyTorch forward."""
    mean = jnp.mean(x, axis=(1, 2, 3), keepdims=True)
    var = jnp.mean((x - mean) ** 2, axis=(1, 2, 3), keepdims=True)
    y = (x - mean) * jax.lax.rsqrt(var + eps)
    if elementwise_affine:
        y = y * weight[:, idx, :][None] + bias[:, idx, :][None]
    return y


if __name__ == "__main__":
    # Module-consistent small shapes: batch=2, channels=4, 16 of 20 nodes, seq=8.
    B, C, N_SEL, N_ALL, T, EPS = 2, 4, 16, 20, 8, 1e-5

    key = jax.random.PRNGKey(0)
    kx, kw, kb, ki = jax.random.split(key, 4)

    x = jax.random.normal(kx, (B, C, N_SEL, T), jnp.float32)
    # Module init is ones/zeros; use random affine params so the affine path is exercised.
    weight = jax.random.normal(kw, (C, N_ALL, T), jnp.float32)
    bias = jax.random.normal(kb, (C, N_ALL, T), jnp.float32)
    idx = jax.random.permutation(ki, N_ALL)[:N_SEL].astype(jnp.int32)

    # elementwise_affine=True path
    y = layer_norm_forward(x, weight, bias, idx, eps=EPS, elementwise_affine=True)
    y = jax.block_until_ready(y)
    ref = _reference(x, weight, bias, idx, EPS, elementwise_affine=True)
    assert y.shape == x.shape
    assert jnp.allclose(y, ref, atol=1e-5, rtol=1e-5), "affine LayerNorm mismatch"

    # elementwise_affine=False path
    y0 = layer_norm_forward(x, weight, bias, idx, eps=EPS, elementwise_affine=False)
    y0 = jax.block_until_ready(y0)
    ref0 = _reference(x, weight, bias, idx, EPS, elementwise_affine=False)
    assert jnp.allclose(y0, ref0, atol=1e-5, rtol=1e-5), "plain LayerNorm mismatch"

    print("KERNEL_OK")
</pallas_src>

<mosaic_0001>
module attributes {stable_mosaic.version = 11 : i64} {
  func.func @_layernorm_kernel(%arg0: i32, %arg1: memref<2x512xf32, #tpu.memory_space<vmem>>, %arg2: memref<1x512xf32, #tpu.memory_space<vmem>>, %arg3: memref<1x512xf32, #tpu.memory_space<vmem>>, %arg4: memref<2x512xf32, #tpu.memory_space<vmem>>) attributes {dimension_semantics = [#tpu.dimension_semantics<arbitrary>], iteration_bounds = array<i64: 1>, scalar_prefetch = 0 : i64, scratch_operands = 0 : i64, tpu.core_type = #tpu.core_type<tc>, window_params = [{pipeline_mode = #tpu.pipeline_mode<synchronous>, transform_indices = @transform_0, window_bounds = array<i64: 2, 512>}, {pipeline_mode = #tpu.pipeline_mode<synchronous>, transform_indices = @transform_1, window_bounds = array<i64: 1, 512>}, {pipeline_mode = #tpu.pipeline_mode<synchronous>, transform_indices = @transform_2, window_bounds = array<i64: 1, 512>}, {pipeline_mode = #tpu.pipeline_mode<synchronous>, transform_indices = @transform_3, window_bounds = array<i64: 2, 512>}]} {
    %c0 = arith.constant 0 : index
    %c0_0 = arith.constant 0 : index
    %0 = vector.load %arg1[%c0, %c0_0] : memref<2x512xf32, #tpu.memory_space<vmem>>, vector<2x512xf32>
    %cst = arith.constant dense<0.000000e+00> : vector<2xf32>
    %1 = vector.multi_reduction <add>, %0, %cst [1] : vector<2x512xf32> to vector<2xf32>
    %2 = vector.shape_cast %1 : vector<2xf32> to vector<2x1xf32>
    %cst_1 = arith.constant 5.120000e+02 : f32
    %3 = vector.broadcast %cst_1 : f32 to vector<2x1xf32>
    %4 = arith.divf %2, %3 : vector<2x1xf32>
    %5 = vector.broadcast %4 : vector<2x1xf32> to vector<2x512xf32>
    %6 = arith.subf %0, %5 : vector<2x512xf32>
    %7 = arith.mulf %6, %6 : vector<2x512xf32>
    %cst_2 = arith.constant dense<0.000000e+00> : vector<2xf32>
    %8 = vector.multi_reduction <add>, %7, %cst_2 [1] : vector<2x512xf32> to vector<2xf32>
    %9 = vector.shape_cast %8 : vector<2xf32> to vector<2x1xf32>
    %cst_3 = arith.constant 5.120000e+02 : f32
    %10 = vector.broadcast %cst_3 : f32 to vector<2x1xf32>
    %11 = arith.divf %9, %10 : vector<2x1xf32>
    %cst_4 = arith.constant 9.99999974E-6 : f32
    %12 = vector.broadcast %cst_4 : f32 to vector<2x1xf32>
    %13 = arith.addf %11, %12 : vector<2x1xf32>
    %14 = math.rsqrt %13 : vector<2x1xf32>
    %15 = vector.broadcast %14 : vector<2x1xf32> to vector<2x512xf32>
    %16 = arith.mulf %6, %15 : vector<2x512xf32>
    %c0_5 = arith.constant 0 : index
    %c0_6 = arith.constant 0 : index
    %17 = vector.load %arg2[%c0_5, %c0_6] : memref<1x512xf32, #tpu.memory_space<vmem>>, vector<1x512xf32>
    %18 = vector.broadcast %17 : vector<1x512xf32> to vector<2x512xf32>
    %19 = arith.mulf %16, %18 : vector<2x512xf32>
    %c0_7 = arith.constant 0 : index
    %c0_8 = arith.constant 0 : index
    %20 = vector.load %arg3[%c0_7, %c0_8] : memref<1x512xf32, #tpu.memory_space<vmem>>, vector<1x512xf32>
    %21 = vector.broadcast %20 : vector<1x512xf32> to vector<2x512xf32>
    %22 = arith.addf %19, %21 : vector<2x512xf32>
    %c0_9 = arith.constant 0 : index
    %c0_10 = arith.constant 0 : index
    %23 = vector.load %arg4[%c0_9, %c0_10] : memref<2x512xf32, #tpu.memory_space<vmem>>, vector<2x512xf32>
    tpu.vector_store %arg4[%c0_9, %c0_10], %22 {strides = array<i32>} : memref<2x512xf32, #tpu.memory_space<vmem>>, vector<2x512xf32>,
    return
  }
  func.func @transform_0(%arg0: i32) -> (i32, i32) {
    %c0_i32 = arith.constant 0 : i32
    %c0_i32_0 = arith.constant 0 : i32
    %c0_i32_1 = arith.constant 0 : i32
    return %c0_i32, %c0_i32_0 : i32, i32
  }
  func.func @transform_1(%arg0: i32) -> (i32, i32) {
    %c0_i32 = arith.constant 0 : i32
    %c0_i32_0 = arith.constant 0 : i32
    %c0_i32_1 = arith.constant 0 : i32
    return %c0_i32, %c0_i32_0 : i32, i32
  }
  func.func @transform_2(%arg0: i32) -> (i32, i32) {
    %c0_i32 = arith.constant 0 : i32
    %c0_i32_0 = arith.constant 0 : i32
    %c0_i32_1 = arith.constant 0 : i32
    return %c0_i32, %c0_i32_0 : i32, i32
  }
  func.func @transform_3(%arg0: i32) -> (i32, i32) {
    %c0_i32 = arith.constant 0 : i32
    %c0_i32_0 = arith.constant 0 : i32
    %c0_i32_1 = arith.constant 0 : i32
    return %c0_i32, %c0_i32_0 : i32, i32
  }
}

</mosaic_0001>

<bundles_post_ra>
// kernel: tpu_custom_call.1
= control target key start
LH: loop header
LB: loop body
LE: loop exit
PB: predicated region body
PF: predicated region fallthrough
CT: control target
= control target key end

     0   :  { %8 = vsyncpa [#allocation3], 0  ;;  %s382_s0 = inlined_call_operand.hbm [shape: f32[2,512], index: 0, kind: input, shape index: {}]   ;;  %s383_s1 = inlined_call_operand.hbm [shape: f32[1,512], index: 1, kind: input, shape index: {}]   ;;  %s384_s2 = inlined_call_operand.hbm [shape: f32[1,512], index: 2, kind: input, shape index: {}]   ;;  %s385_s3 = inlined_call_operand.hbm [shape: f32[2,512], index: 3, kind: output, shape index: {}]  }
   0x1   :  { %9 = vsyncpa [#allocation6], 0 }
   0x2   :  { %10 = vsyncpa [#allocation4], 0  ;;  %s326_s12 = smov [#allocation5]   ;;  %s327_s14 = smov [#allocation2]  }
   0x3   :  { %s27_s13 = sshll.u32 %s326_s12, 4  ;;  %s17_s15 = sshll.u32 %s327_s14, 4  ;;  %s28_s13 = int_to_ptr.vmem [resolvable:$true] %s27_s13  ;;  %s18_s15 = int_to_ptr.vmem [resolvable:$true] %s17_s15 }
   0x4   :  { %s248_s16 = scalar_lea.vmem %s28_s13, 64  ;;  %p253_p1 = scmp.lt.s32.totalorder %s28_s13, %s28_s13 }
   0x5   :  { %p249_p0 = scmp.ne.s32.totalorder %s28_s13, %s248_s16  ;;  %p254_p2 = scmp.lt.s32.totalorder %s248_s16, %s248_s16 }
   0x7   :  { %p255_p3 = por %p254_p2, %p253_p1 }
   0x9   :  { %p256_p4 = pnand %p255_p3, %p249_p0 }
   0xb   :  { %259 = shalt.err (!%p256_p4)
}
   0xc   :  { %30 = dma.hbm_to_vmem [thread:$0]  %s383_s1, 64, %s28_s13, [#allocation6]  }
   0xd   :  { %s268_s19 = scalar_lea.vmem %s18_s15, 128  ;;  %p273_p6 = scmp.lt.s32.totalorder %s18_s15, %s18_s15 }
   0xe   :  { %p269_p5 = scmp.ne.s32.totalorder %s18_s15, %s268_s19  ;;  %p274_p7 = scmp.lt.s32.totalorder %s268_s19, %s268_s19 }
  0x10   :  { %p275_p8 = por %p274_p7, %p273_p6 }
  0x12   :  { %p276_p9 = pnand %p275_p8, %p269_p5 }
  0x14   :  { %279 = shalt.err (!%p276_p9)
}
  0x15   :  { %20 = dma.hbm_to_vmem [thread:$0]  %s382_s0, 128, %s18_s15, [#allocation3]  }
  0x16   :  { %s328_s22 = smov [#allocation7]  }
  0x17   :  { %s37_s23 = sshll.u32 %s328_s22, 4  ;;  %s38_s23 = int_to_ptr.vmem [resolvable:$true] %s37_s23 }
  0x18   :  { %s288_s24 = scalar_lea.vmem %s38_s23, 64  ;;  %p293_p11 = scmp.lt.s32.totalorder %s38_s23, %s38_s23 }
  0x19   :  { %p289_p10 = scmp.ne.s32.totalorder %s38_s23, %s288_s24  ;;  %p294_p12 = scmp.lt.s32.totalorder %s288_s24, %s288_s24 }
  0x1b   :  { %p295_p13 = por %p294_p12, %p293_p11 }
  0x1d   :  { %p296_p0 = pnand %p295_p13, %p289_p10 }
  0x1f   :  { %299 = shalt.err (!%p296_p0)
}
  0x20   :  { %40 = dma.hbm_to_vmem [thread:$0]  %s384_s2, 64, %s38_s23, [#allocation6]  }
  0x21   :  { %320 = dma.done.wait [#allocation3], 128  }
  0x22   :  { %321 = vsyncadd [#allocation3], 4294967168 }
  0x23   :  { %322 = dma.done.wait [#allocation6], 128  }
  0x24   :  { %323 = vsyncadd [#allocation6], 4294967168  ;;  %v56_v0 = vlaneseq  ;;  %v329_v1 = vmov 1983009808   ;;  %v50_v6 = vld [vmem:[#allocation2] sm:$0xff]  ;;  %vm73_vm0 = vcmask 1041408  }
  0x25   :  { %v54_v2 = vunpack.c.l.s4 %v329_v1  ;;  %v52_v7 = vcombine.high %v50_v6, %v50_v6  ;;  %v330_v19 = vmov 269488144   ;;  %v140_v47 = vld [vmem:[#allocation5] sm:$0xf]  ;;  %v177_v48 = vld [vmem:[#allocation7] sm:$0xf] }
  0x26   :  { %v57_v3 = vshrl.u32 %v56_v0, 7  ;;  %v87_v20 = vunpack.c.l.s4 %v330_v19  ;;  %s331_s0 = smov [#allocation8]  }
  0x27   :  { %v55_v4 = vunpack.c.0.s8 %v54_v2  ;;  %s221_s2 = sshll.u32 %s331_s0, 4  ;;  %s222_s2 = int_to_ptr.vmem [resolvable:$true] %s221_s2 }
  0x28   :  { %v88_v21 = vunpack.c.0.s8 %v87_v20  ;;  %v144_v42 = vsub.s32 0, %v57_v3  ;;  %v148_v44 = vsub.s32 1, %v57_v3  ;;  %v152_v45 = vsub.s32 2, %v57_v3  ;;  %s300_s26 = scalar_lea.vmem %s222_s2, 128  ;;  %p305_p2 = scmp.lt.s32.totalorder %s222_s2, %s222_s2 }
  0x29   :  { %v361_v5 = vsub.s32 %v55_v4, %v57_v3  ;;  %v156_v46 = vsub.s32 3, %v57_v3  ;;  %p301_p1 = scmp.ne.s32.totalorder %s222_s2, %s300_s26  ;;  %p306_p3 = scmp.lt.s32.totalorder %s300_s26, %s300_s26 }
  0x2a   :  { %v91_v22 = vsub.s32 %v88_v21, %v57_v3  ;;  %v145_v49 = vrot.slane %v140_v47, %v144_v42  ;;  %v149_v50 = vrot.slane %v140_v47, %v148_v44  ;;  %v153_v51 = vrot.slane %v140_v47, %v152_v45 }
  0x2b   :  { %v59_v8 = vrot.slane %v50_v6, %v361_v5  ;;  %v66_v9 = vrot.slane %v52_v7, %v361_v5  ;;  %v157_v52 = vrot.slane %v140_v47, %v156_v46  ;;  %v182_v53 = vrot.slane %v177_v48, %v144_v42  ;;  %p307_p4 = por %p306_p3, %p305_p2 }
  0x2c   :  { %v186_v54 = vrot.slane %v177_v48, %v148_v44  ;;  %v190_v55 = vrot.slane %v177_v48, %v152_v45  ;;  %v194_v56 = vrot.slane %v177_v48, %v156_v46  ;;  %v158_v57 = vcombine.low %v145_v49, %v149_v50 }
  0x2d   :  { %v67_v10 = vcombine.high %v59_v8, %v59_v8  ;;  %v74_v11 = vsel %vm73_vm0, %v59_v8, 0.0  ;;  %v68_v12 = vcombine.high %v66_v9, %v66_v9  ;;  %v77_v14 = vsel %vm73_vm0, %v66_v9, 0.0  ;;  %p308_p5 = pnand %p307_p4, %p301_p1 }
  0x2e   :  { %v159_v58 = vcombine.low %v153_v51, %v157_v52  ;;  %v195_v59 = vcombine.low %v182_v53, %v186_v54  ;;  %v196_v60 = vcombine.low %v190_v55, %v194_v56  ;;  %v166_v61 = vrot.slane %v158_v57, %v361_v5 }
  0x2f   :  { %v75_v13 = vsel %vm73_vm0, %v67_v10, 0.0  ;;  %v79_v16 = vsel %vm73_vm0, %v68_v12, 0.0 }
  0x30   :  { %v76_v15 = vadd.f32 %v75_v13, %v74_v11  ;;  %v173_v62 = vrot.slane %v159_v58, %v361_v5  ;;  %v203_v63 = vrot.slane %v195_v59, %v361_v5  ;;  %v210_v0 = vrot.slane %v196_v60, %v361_v5 }
  0x32   :  { %v78_v17 = vadd.f32 %v77_v14, %v76_v15  ;;  %v174_v3 = vcombine.low %v166_v61, %v173_v62 }
  0x34   :  { %v80_v18 = vadd.f32 %v79_v16, %v78_v17 }
  0x36   :  { %81 = vadd.xlane.f32.xlu0 %v80_v18 }
  0xbf   :  { %v82_v23 = vpop.xlane.xlu0 %81 }
  0xc0   :  { %v84_v24 = vmul.f32 0.001953125, %v82_v23 }
  0xc2   :  { %v92_v25 = vrot.slane %v84_v24, %v91_v22 }
  0xc4   :  { %v94_v26 = vsub.f32 %v50_v6, %v92_v25  ;;  %v211_v6 = vcombine.low %v203_v63, %v210_v0 }
  0xc6   :  { %v95_v27 = vmul.f32 %v94_v26, %v94_v26 }
  0xc8   :  { %v97_v28 = vcombine.high %v95_v27, %v95_v27  ;;  %v104_v29 = vrot.slane %v95_v27, %v361_v5 }
  0xca   :  { %v111_v30 = vrot.slane %v97_v28, %v361_v5  ;;  %v112_v31 = vcombine.high %v104_v29, %v104_v29  ;;  %v118_v33 = vsel %vm73_vm0, %v104_v29, 0.0 }
  0xcc   :  { %v113_v32 = vcombine.high %v111_v30, %v111_v30  ;;  %v119_v34 = vsel %vm73_vm0, %v112_v31, 0.0  ;;  %v121_v36 = vsel %vm73_vm0, %v111_v30, 0.0 }
  0xcd   :  { %v120_v35 = vadd.f32 %v119_v34, %v118_v33 }
  0xce   :  { %v123_v38 = vsel %vm73_vm0, %v113_v32, 0.0 }
  0xcf   :  { %v122_v37 = vadd.f32 %v121_v36, %v120_v35 }
  0xd1   :  { %v124_v39 = vadd.f32 %v123_v38, %v122_v37 }
  0xd3   :  { %125 = vadd.xlane.f32.xlu0 %v124_v39 }
 0x15c   :  { %v126_v40 = vpop.xlane.xlu0 %125 }
 0x15d   :  { %v127_v41 = vmul.f32 0.001953125, %v126_v40 }
 0x15f   :  { %v128_v43 = vadd.f32 1e-05, %v127_v41 }
 0x161   :  { %238 = vrsqrt.f32 %v128_v43 }
 0x16e   :  { %v239_v1 = vpop.eup %238 }
 0x16f   :  { %v137_v2 = vrot.slane %v239_v1, %v91_v22 }
 0x171   :  { %v139_v4 = vmul.f32 %v137_v2, %v94_v26 }
 0x173   :  { %v176_v7 = vmul.f32 %v174_v3, %v139_v4 }
 0x175   :  { %v213_v8 = vadd.f32 %v211_v6, %v176_v7 }
 0x177   :  { %214 = vst [vmem:[#allocation8] sm:$0xff] %v213_v8 }
 0x178   :  { %311 = shalt.err (!%p308_p5)
}
 0x179   :  { %224 = dma.vmem_to_hbm [thread:$0]  %s222_s2, 128, %s385_s3, [#allocation4]  }
 0x17a   :  { %324 = dma.done.wait [#allocation4], 128  }
 0x17b   :  { %325 = vsyncadd [#allocation4], 4294967168 }
 0x17c   :  { %228 = vsyncpa [#allocation3], 1 }
 0x17d   :  { %229 = vsyncpa [#allocation6], 1 }
 0x17e   :  { %230 = vsyncpa [#allocation4], 1 }

</bundles_post_ra>
